<compile_context>
chip_gen: v7x
topology: tpu7x:2x2x1
jax: 0.10.0
libtpu: 0.0.40
codegen_flags: <defaults>
</compile_context>

<pallas_src>
import functools

import jax
import jax.numpy as jnp
from jax.experimental import pallas as pl
from jax.experimental.pallas import tpu as pltpu


# ---------------------------------------------------------------------------
# Kernels
# ---------------------------------------------------------------------------

def _adain_fused_kernel(x_ref, s_ref, wg_ref, wb_ref, o_ref, *, eps, inv_hw):
    """Fused style-linear + InstanceNorm2d + affine modulation.

    Blocks: x/o (1, cb, HW) | s (1, 1, sd+1) | wg/wb (cb, sd+1).
    The EqualLinear bias is folded into the last weight column and matches the
    trailing 1.0 lane of the style row.
    """
    s_row = s_ref[0]                                                 # (1, sd+1)
    gamma = jnp.sum(wg_ref[...] * s_row, axis=-1, keepdims=True)     # (cb, 1)
    beta = jnp.sum(wb_ref[...] * s_row, axis=-1, keepdims=True)      # (cb, 1)

    x = x_ref[0]                                                     # (cb, HW)
    # One-pass statistics (f32 accumulation; inputs here are activations, so
    # E[x^2]-mean^2 cancellation is benign at f32).
    s1 = jnp.sum(x, axis=-1, keepdims=True)                          # (cb, 1)
    s2 = jnp.sum(x * x, axis=-1, keepdims=True)                      # (cb, 1)
    mean = s1 * inv_hw
    var = jnp.maximum(s2 * inv_hw - mean * mean, 0.0)                # biased var
    a = gamma * jax.lax.rsqrt(var + eps)                             # EUP rsqrt
    b = beta - a * mean
    o_ref[0] = x * a + b                                             # folded affine


def _stats_kernel(x_ref, sum_ref, sq_ref):
    """Fallback pass 1: HW-tiled sum / sum-of-squares reduction."""
    @pl.when(pl.program_id(2) == 0)
    def _():
        sum_ref[...] = jnp.zeros_like(sum_ref)
        sq_ref[...] = jnp.zeros_like(sq_ref)
    x = x_ref[0]                                                     # (cb, hw_t)
    sum_ref[0] += jnp.sum(x, axis=-1, keepdims=True)
    sq_ref[0] += jnp.sum(x * x, axis=-1, keepdims=True)


def _apply_kernel(x_ref, a_ref, b_ref, o_ref):
    """Fallback pass 2: o = x * a + b with per-channel a, b."""
    o_ref[0] = x_ref[0] * a_ref[0] + b_ref[0]


# ---------------------------------------------------------------------------
# Tiling / VMEM budgeting
# ---------------------------------------------------------------------------

def _vmem_budgets(tile_budget_override=None):
    phys = 64 << 20                      # conservative default = v7x per-TC VMEM
    try:
        phys = int(getattr(pltpu.get_tpu_info(), "vmem_capacity_bytes", phys))
    except Exception:
        pass
    # ~16 MiB tiles on 128 MiB parts (v5e/v6e), ~8 MiB on 64 MiB parts (v7x).
    tile_budget = max(2 << 20, min(16 << 20, phys // 8))
    if tile_budget_override is not None:
        tile_budget = int(tile_budget_override)
    # Pipelined footprint ~ 4-5x tile (double-buffered in/out) + weights + slack.
    vmem_limit = int(min(phys * 7 // 8, max(32 << 20, 6 * tile_budget)))
    return tile_budget, vmem_limit


def _c_block_candidates(C):
    """Layout-legal channel blocks: multiples of 8 dividing C, plus C itself."""
    cands = {d for d in range(8, C + 1, 8) if C % d == 0}
    cands.add(C)
    return sorted(cands, reverse=True)


# ---------------------------------------------------------------------------
# Forward
# ---------------------------------------------------------------------------

def adaptive_instance_norm(x, style, weight, bias, eps=1e-5,
                           _tile_budget_bytes=None):
    """AdaIN forward, matching the PyTorch module.

    x:      (B, C, H, W)      NCHW input
    style:  (B, style_dim)
    weight: (2*C, style_dim)  EqualLinear weight_orig (EqualLR scale applied here)
    bias:   (2*C,)            EqualLinear bias (first C -> gamma, last C -> beta)
    """
    B, C, H, W = x.shape
    sd = style.shape[1]
    HW = H * W
    itemsize = 4
    tile_budget, vmem_limit = _vmem_budgets(_tile_budget_bytes)

    # EqualLR hook: effective weight = weight_orig * sqrt(2 / fan_in), fan_in = style_dim.
    w_eff = weight.astype(jnp.float32) * (2.0 / sd) ** 0.5
    b32 = bias.astype(jnp.float32)
    x3 = x.reshape(B, C, HW).astype(jnp.float32)        # free reshape: lanes = HW
    style32 = style.astype(jnp.float32)
    eps = float(eps)

    cands = _c_block_candidates(C)
    # Per-step residency for the fused path: x tile + the two weight blocks.
    fused_cost = lambda cb: cb * (HW + 2 * (sd + 1)) * itemsize
    cb_fused = next((cb for cb in cands if fused_cost(cb) <= tile_budget), None)

    # ------------------------- fused single-pass path -------------------------
    if cb_fused is not None:
        cb = cb_fused
        # v7x has 2 TensorCores: keep at least 2 independent grid steps.
        if B * (C // cb) < 2:
            for d in cands:
                if d < cb:
                    cb = d
                    break

        # Fold bias into an extra weight column; style gets a trailing 1.0 lane.
        wg_aug = jnp.concatenate([w_eff[:C], b32[:C, None]], axis=1)    # (C, sd+1)
        wb_aug = jnp.concatenate([w_eff[C:], b32[C:, None]], axis=1)    # (C, sd+1)
        s_aug = jnp.concatenate(
            [style32, jnp.ones((B, 1), jnp.float32)], axis=1
        ).reshape(B, 1, sd + 1)

        grid = (C // cb, B)   # B innermost -> weight block resident per c-tile
        out3 = pl.pallas_call(
            functools.partial(_adain_fused_kernel, eps=eps, inv_hw=1.0 / HW),
            out_shape=jax.ShapeDtypeStruct((B, C, HW), jnp.float32),
            grid=grid,
            in_specs=[
                pl.BlockSpec((1, cb, HW), lambda c, b: (b, c, 0)),       # x
                pl.BlockSpec((1, 1, sd + 1), lambda c, b: (b, 0, 0)),    # style (+1 lane)
                pl.BlockSpec((cb, sd + 1), lambda c, b: (c, 0)),         # [W_gamma | b_gamma]
                pl.BlockSpec((cb, sd + 1), lambda c, b: (c, 0)),         # [W_beta  | b_beta ]
            ],
            out_specs=pl.BlockSpec((1, cb, HW), lambda c, b: (b, c, 0)),
            compiler_params=pltpu.CompilerParams(
                dimension_semantics=("parallel", "parallel"),
                vmem_limit_bytes=vmem_limit),
        )(x3, s_aug, wg_aug, wb_aug)
        return out3.reshape(B, C, H, W)

    # ------------------ fallback: split HW (very large feature maps) ----------
    cb = cands[-1]                       # smallest legal channel block (usually 8)
    hw_cands = sorted({d for d in range(128, HW + 1, 128) if HW % d == 0},
                      reverse=True)
    if hw_cands:
        hw_t = next((h for h in hw_cands if cb * h * itemsize <= tile_budget),
                    hw_cands[-1])
    else:
        hw_t = HW
    # TODO(synk): if HW is not a multiple of 128 AND a (cb, HW) tile still does
    # not fit VMEM, a channels-on-lanes relayout would be required; realistic
    # AdaIN shapes never hit that branch.

    # Hoist the tiny (B,sd)x(sd,2C) style linear out of the split path.
    st = style32 @ w_eff.T + b32                                   # (B, 2C)
    gamma = st[:, :C]
    beta = st[:, C:]

    grid = (B, C // cb, HW // hw_t)
    ssum, ssq = pl.pallas_call(
        _stats_kernel,
        out_shape=(jax.ShapeDtypeStruct((B, C, 1), jnp.float32),
                   jax.ShapeDtypeStruct((B, C, 1), jnp.float32)),
        grid=grid,
        in_specs=[pl.BlockSpec((1, cb, hw_t), lambda b, c, k: (b, c, k))],
        out_specs=[pl.BlockSpec((1, cb, 1), lambda b, c, k: (b, c, 0)),
                   pl.BlockSpec((1, cb, 1), lambda b, c, k: (b, c, 0))],
        compiler_params=pltpu.CompilerParams(
            dimension_semantics=("parallel", "parallel", "arbitrary"),
            vmem_limit_bytes=vmem_limit),
    )(x3)

    inv_hw = 1.0 / HW
    mean = ssum * inv_hw
    var = jnp.maximum(ssq * inv_hw - mean * mean, 0.0)
    a = gamma[:, :, None] * jax.lax.rsqrt(var + eps)               # (B, C, 1)
    b = beta[:, :, None] - a * mean

    out3 = pl.pallas_call(
        _apply_kernel,
        out_shape=jax.ShapeDtypeStruct((B, C, HW), jnp.float32),
        grid=grid,
        in_specs=[pl.BlockSpec((1, cb, hw_t), lambda bb, c, k: (bb, c, k)),
                  pl.BlockSpec((1, cb, 1), lambda bb, c, k: (bb, c, 0)),
                  pl.BlockSpec((1, cb, 1), lambda bb, c, k: (bb, c, 0))],
        out_specs=pl.BlockSpec((1, cb, hw_t), lambda bb, c, k: (bb, c, k)),
        compiler_params=pltpu.CompilerParams(
            dimension_semantics=("parallel", "parallel", "parallel"),
            vmem_limit_bytes=vmem_limit),
    )(x3, a, b)
    return out3.reshape(B, C, H, W)


# ---------------------------------------------------------------------------
# Pure-JAX reference (for the self-check)
# ---------------------------------------------------------------------------

def adain_reference(x, style, weight, bias, eps=1e-5):
    B, C, H, W = x.shape
    sd = style.shape[1]
    st = style @ (weight * (2.0 / sd) ** 0.5).T + bias             # (B, 2C)
    gamma = st[:, :C][:, :, None, None]
    beta = st[:, C:][:, :, None, None]
    mean = jnp.mean(x, axis=(2, 3), keepdims=True)
    var = jnp.var(x, axis=(2, 3), keepdims=True)                   # biased
    return gamma * (x - mean) / jnp.sqrt(var + eps) + beta


if __name__ == "__main__":
    key = jax.random.PRNGKey(0)

    # --- main check: fused path --------------------------------------------
    B, C, H, W, SD = 2, 128, 16, 16, 32
    kx, ks, kw, k2 = jax.random.split(key, 4)
    x = jax.random.normal(kx, (B, C, H, W), jnp.float32)
    style = jax.random.normal(ks, (B, SD), jnp.float32)
    # EqualLinear init: weight_orig ~ N(0,1); bias[:C]=1 (gamma), bias[C:]=0 (beta).
    weight = jax.random.normal(kw, (2 * C, SD), jnp.float32)
    bias = jnp.concatenate([jnp.ones((C,), jnp.float32), jnp.zeros((C,), jnp.float32)])

    fwd = jax.jit(lambda a, s, w, b: adaptive_instance_norm(a, s, w, b))
    out = jax.block_until_ready(fwd(x, style, weight, bias))
    assert out.shape == (B, C, H, W), out.shape
    assert bool(jnp.all(jnp.isfinite(out)))
    err = float(jnp.max(jnp.abs(out - adain_reference(x, style, weight, bias))))
    assert err < 1e-3, f"fused path max abs err {err}"

    # --- secondary check: force the HW-split fallback path ------------------
    B2, C2, H2, W2 = 1, 8, 32, 32
    kx2, ks2, kw2 = jax.random.split(k2, 3)
    x2 = jax.random.normal(kx2, (B2, C2, H2, W2), jnp.float32)
    style2 = jax.random.normal(ks2, (B2, SD), jnp.float32)
    weight2 = jax.random.normal(kw2, (2 * C2, SD), jnp.float32)
    bias2 = jnp.concatenate([jnp.ones((C2,), jnp.float32), jnp.zeros((C2,), jnp.float32)])

    fwd_split = jax.jit(lambda a, s, w, b: adaptive_instance_norm(
        a, s, w, b, _tile_budget_bytes=8 * 1024))   # tiny budget -> split path
    out2 = jax.block_until_ready(fwd_split(x2, style2, weight2, bias2))
    err2 = float(jnp.max(jnp.abs(out2 - adain_reference(x2, style2, weight2, bias2))))
    assert err2 < 1e-3, f"split path max abs err {err2}"

    print("KERNEL_OK")
</pallas_src>

<mosaic_0001>
module attributes {stable_mosaic.version = 11 : i64} {
  func.func @_adain_fused_kernel(%arg0: i32, %arg1: i32, %arg2: memref<1x128x256xf32, #tpu.memory_space<vmem>>, %arg3: memref<1x1x33xf32, #tpu.memory_space<vmem>>, %arg4: memref<128x33xf32, #tpu.memory_space<vmem>>, %arg5: memref<128x33xf32, #tpu.memory_space<vmem>>, %arg6: memref<1x128x256xf32, #tpu.memory_space<vmem>>) attributes {dimension_semantics = [#tpu.dimension_semantics<parallel>, #tpu.dimension_semantics<parallel>], iteration_bounds = array<i64: 1, 2>, scalar_prefetch = 0 : i64, scratch_operands = 0 : i64, tpu.core_type = #tpu.core_type<tc>, window_params = [{transform_indices = @transform_0, window_bounds = array<i64: 1, 128, 256>}, {transform_indices = @transform_1, window_bounds = array<i64: 1, 1, 33>}, {transform_indices = @transform_2, window_bounds = array<i64: 128, 33>}, {transform_indices = @transform_3, window_bounds = array<i64: 128, 33>}, {transform_indices = @transform_4, window_bounds = array<i64: 1, 128, 256>}]} {
    %c0 = arith.constant 0 : index
    %c0_0 = arith.constant 0 : index
    %c0_1 = arith.constant 0 : index
    %0 = vector.load %arg3[%c0, %c0_0, %c0_1] : memref<1x1x33xf32, #tpu.memory_space<vmem>>, vector<1x1x33xf32>
    %1 = vector.shape_cast %0 : vector<1x1x33xf32> to vector<1x33xf32>
    %c0_2 = arith.constant 0 : index
    %c0_3 = arith.constant 0 : index
    %2 = vector.load %arg4[%c0_2, %c0_3] : memref<128x33xf32, #tpu.memory_space<vmem>>, vector<128x33xf32>
    %3 = vector.broadcast %1 : vector<1x33xf32> to vector<128x33xf32>
    %4 = arith.mulf %2, %3 : vector<128x33xf32>
    %cst = arith.constant dense<0.000000e+00> : vector<128xf32>
    %5 = vector.multi_reduction <add>, %4, %cst [1] : vector<128x33xf32> to vector<128xf32>
    %6 = vector.shape_cast %5 : vector<128xf32> to vector<128x1xf32>
    %c0_4 = arith.constant 0 : index
    %c0_5 = arith.constant 0 : index
    %7 = vector.load %arg5[%c0_4, %c0_5] : memref<128x33xf32, #tpu.memory_space<vmem>>, vector<128x33xf32>
    %8 = vector.broadcast %1 : vector<1x33xf32> to vector<128x33xf32>
    %9 = arith.mulf %7, %8 : vector<128x33xf32>
    %cst_6 = arith.constant dense<0.000000e+00> : vector<128xf32>
    %10 = vector.multi_reduction <add>, %9, %cst_6 [1] : vector<128x33xf32> to vector<128xf32>
    %11 = vector.shape_cast %10 : vector<128xf32> to vector<128x1xf32>
    %c0_7 = arith.constant 0 : index
    %c0_8 = arith.constant 0 : index
    %c0_9 = arith.constant 0 : index
    %12 = vector.load %arg2[%c0_7, %c0_8, %c0_9] : memref<1x128x256xf32, #tpu.memory_space<vmem>>, vector<1x128x256xf32>
    %13 = vector.shape_cast %12 : vector<1x128x256xf32> to vector<128x256xf32>
    %cst_10 = arith.constant dense<0.000000e+00> : vector<128xf32>
    %14 = vector.multi_reduction <add>, %13, %cst_10 [1] : vector<128x256xf32> to vector<128xf32>
    %15 = vector.shape_cast %14 : vector<128xf32> to vector<128x1xf32>
    %16 = arith.mulf %13, %13 : vector<128x256xf32>
    %cst_11 = arith.constant dense<0.000000e+00> : vector<128xf32>
    %17 = vector.multi_reduction <add>, %16, %cst_11 [1] : vector<128x256xf32> to vector<128xf32>
    %18 = vector.shape_cast %17 : vector<128xf32> to vector<128x1xf32>
    %cst_12 = arith.constant 3.906250e-03 : f32
    %19 = vector.broadcast %cst_12 : f32 to vector<128x1xf32>
    %20 = arith.mulf %15, %19 : vector<128x1xf32>
    %cst_13 = arith.constant 3.906250e-03 : f32
    %21 = vector.broadcast %cst_13 : f32 to vector<128x1xf32>
    %22 = arith.mulf %18, %21 : vector<128x1xf32>
    %23 = arith.mulf %20, %20 : vector<128x1xf32>
    %24 = arith.subf %22, %23 : vector<128x1xf32>
    %cst_14 = arith.constant 0.000000e+00 : f32
    %25 = vector.broadcast %cst_14 : f32 to vector<128x1xf32>
    %26 = arith.maximumf %24, %25 : vector<128x1xf32>
    %cst_15 = arith.constant 9.99999974E-6 : f32
    %27 = vector.broadcast %cst_15 : f32 to vector<128x1xf32>
    %28 = arith.addf %26, %27 : vector<128x1xf32>
    %29 = math.rsqrt %28 : vector<128x1xf32>
    %30 = arith.mulf %6, %29 : vector<128x1xf32>
    %31 = arith.mulf %30, %20 : vector<128x1xf32>
    %32 = arith.subf %11, %31 : vector<128x1xf32>
    %33 = vector.broadcast %30 : vector<128x1xf32> to vector<128x256xf32>
    %34 = arith.mulf %13, %33 : vector<128x256xf32>
    %35 = vector.broadcast %32 : vector<128x1xf32> to vector<128x256xf32>
    %36 = arith.addf %34, %35 : vector<128x256xf32>
    %c0_16 = arith.constant 0 : index
    %c0_17 = arith.constant 0 : index
    %c0_18 = arith.constant 0 : index
    %37 = vector.load %arg6[%c0_16, %c0_17, %c0_18] : memref<1x128x256xf32, #tpu.memory_space<vmem>>, vector<1x128x256xf32>
    %38 = vector.shape_cast %37 : vector<1x128x256xf32> to vector<128x256xf32>
    %39 = vector.shape_cast %36 : vector<128x256xf32> to vector<1x128x256xf32>
    tpu.vector_store %arg6[%c0_16, %c0_17, %c0_18], %39 {strides = array<i32>} : memref<1x128x256xf32, #tpu.memory_space<vmem>>, vector<1x128x256xf32>,
    return
  }
  func.func @transform_0(%arg0: i32, %arg1: i32) -> (i32, i32, i32) {
    %c0_i32 = arith.constant 0 : i32
    %c0_i32_0 = arith.constant 0 : i32
    return %arg1, %arg0, %c0_i32 : i32, i32, i32
  }
  func.func @transform_1(%arg0: i32, %arg1: i32) -> (i32, i32, i32) {
    %c0_i32 = arith.constant 0 : i32
    %c0_i32_0 = arith.constant 0 : i32
    %c0_i32_1 = arith.constant 0 : i32
    return %arg1, %c0_i32, %c0_i32_0 : i32, i32, i32
  }
  func.func @transform_2(%arg0: i32, %arg1: i32) -> (i32, i32) {
    %c0_i32 = arith.constant 0 : i32
    %c0_i32_0 = arith.constant 0 : i32
    return %arg0, %c0_i32 : i32, i32
  }
  func.func @transform_3(%arg0: i32, %arg1: i32) -> (i32, i32) {
    %c0_i32 = arith.constant 0 : i32
    %c0_i32_0 = arith.constant 0 : i32
    return %arg0, %c0_i32 : i32, i32
  }
  func.func @transform_4(%arg0: i32, %arg1: i32) -> (i32, i32, i32) {
    %c0_i32 = arith.constant 0 : i32
    %c0_i32_0 = arith.constant 0 : i32
    return %arg1, %arg0, %c0_i32 : i32, i32, i32
  }
}

</mosaic_0001>

<bundles_post_ra>
// kernel: _lambda_.1
= control target key start
LH: loop header
LB: loop body
LE: loop exit
PB: predicated region body
PF: predicated region fallthrough
CT: control target
= control target key end

     0   :  { %s1140_s15 = smov 0   ;;  %s1142_s16 = smov 0   ;;  %s1803_s0 = inlined_call_operand.vmem [shape: f32[2,128,256], index: 0, kind: input, shape index: {}]   ;;  %s1804_s1 = inlined_call_operand.vmem [shape: f32[2,1,33], index: 1, kind: input, shape index: {}]   ;;  %s1805_s2 = inlined_call_operand.vmem [shape: f32[128,33], index: 2, kind: input, shape index: {}]   ;;  %s1806_s3 = inlined_call_operand.vmem [shape: f32[128,33], index: 3, kind: input, shape index: {}]   ;;  %s1807_s4 = inlined_call_operand.vmem [shape: f32[2,128,256], index: 4, kind: output, shape index: {}]  }
   0x1   :  { %s1144_s17 = smov 0  }
   0x2 LB: > { %s23_s18 = sadd.s32 1, %s1109_s16  ;;  %p1025_p0 = scmp.ge.s32.totalorder %s1113_s17, 1  ;;  %s1113_s17 = sphi %s1144_s17, %s14_s17   ;;  %s1109_s16 = sphi %s1142_s16, %s1877_s16   ;;  %s1105_s15 = sphi %s1140_s15, %s1876_s15  }
   0x3   : > { %p24_p1 = scmp.ge.s32.totalorder %s23_s18, 2  ;;  %p214_p2 = scmp.lt.s32.totalorder %s1113_s17, 3 }
   0x5   : > { %s1879_s18 = smov (%p24_p1, %s23_s18), 0  ;;  %p215_p3 = pnand %p1025_p0, %p214_p2 }
   0x7   : > { %218 = sbr.rel (%p215_p3) target bundleno = 294 (0x126), region = 36 }
   0xe   : > { %p264_p4 = scmp.lt.s32.totalorder %s1105_s15, 1  ;;  %v303_v0 = vld [vmem:[%s1805_s2 + $0x10] sm:$0xff]  ;;  %v301_v1 = vld [vmem:[%s1805_s2] sm:$0xff]  ;;  %v304_v2 = vld [vmem:[%s1805_s2 + $0x18] sm:$0xff]  ;;  %vm339_vm0 = vcmask 269312  }
   0xf   : > { %v302_v3 = vld [vmem:[%s1805_s2 + $0x8] sm:$0xff]  ;;  %v305_v10 = vld [vmem:[%s1805_s2 + $0x20] sm:$0xff]  ;;  %v308_v17 = vld [vmem:[%s1805_s2 + $0x38] sm:$0xff] }
  0x10   : > { %s1881_s15 = smov (!%p264_p4, %s1105_s15), 1  ;;  %v306_v9 = vld [vmem:[%s1805_s2 + $0x28] sm:$0xff]  ;;  %v307_v18 = vld [vmem:[%s1805_s2 + $0x30] sm:$0xff]  ;;  %v309_v24 = vld [vmem:[%s1805_s2 + $0x40] sm:$0xff] }
  0x11   : > { %s276_s29 = scalar_lea.vmem %s1804_s1, %s1881_s15  ;;  %v310_v23 = vld [vmem:[%s1805_s2 + $0x48] sm:$0xff]  ;;  %s1033_s20 = sshll.u32 %s1881_s15, 8  ;;  %v312_v29 = vld [vmem:[%s1805_s2 + $0x58] sm:$0xff]  ;;  %v311_v30 = vld [vmem:[%s1805_s2 + $0x50] sm:$0xff] }
  0x12   : > { %v1176_v4 = vld [vmem:[%s276_s29] ss:$0 sm:$0xff]  ;;  %s1226_s27 = scalar_lea.vmem %s1803_s0, %s1033_s20  ;;  %v314_v35 = vld [vmem:[%s1805_s2 + $0x68] sm:$0xff]  ;;  %v316_v38 = vld [vmem:[%s1805_s2 + $0x78] sm:$0xff]  ;;  %s1708_s29 = scalar_lea.vmem %s1807_s4, %s1033_s20 }
  0x13   : > { %v325_v5 = vmul.f32 %v1176_v4, %v303_v0  ;;  %v323_v6 = vmul.f32 %v1176_v4, %v301_v1  ;;  %v326_v7 = vmul.f32 %v1176_v4, %v304_v2  ;;  %v324_v8 = vmul.f32 %v1176_v4, %v302_v3  ;;  %v313_v36 = vld [vmem:[%s1805_s2 + $0x60] sm:$0xff]  ;;  %v1239_v37 = vld [vmem:[%s1226_s27 + $0x10] sm:$0xff]  ;;  %v1250_v42 = vld [vmem:[%s1226_s27 + $0x18] sm:$0xff] }
  0x14   : > { %v328_v15 = vmul.f32 %v1176_v4, %v306_v9  ;;  %v327_v16 = vmul.f32 %v1176_v4, %v305_v10  ;;  %v330_v21 = vmul.f32 %v1176_v4, %v308_v17  ;;  %v329_v22 = vmul.f32 %v1176_v4, %v307_v18  ;;  %v315_v39 = vld [vmem:[%s1805_s2 + $0x70] sm:$0xff]  ;;  %v1253_v43 = vld [vmem:[%s1226_s27] sm:$0xff]  ;;  %v1256_v44 = vld [vmem:[%s1226_s27 + $0x8] sm:$0xff] }
  0x15   : > { %v346_v11 = vsel %vm339_vm0, %v325_v5, 0.0  ;;  %v340_v12 = vsel %vm339_vm0, %v323_v6, 0.0  ;;  %v349_v13 = vsel %vm339_vm0, %v326_v7, 0.0  ;;  %v343_v14 = vsel %vm339_vm0, %v324_v8, 0.0  ;;  %v1261_v47 = vld [vmem:[%s1226_s27 + $0x30] sm:$0xff]  ;;  %v1264_v48 = vld [vmem:[%s1226_s27 + $0x38] sm:$0xff] }
  0x16   : > { %347 = vadd.xlane.f32.xlu1 %v346_v11  ;;  %341 = vadd.xlane.f32.xlu0 %v340_v12  ;;  %v355_v19 = vsel %vm339_vm0, %v328_v15, 0.0  ;;  %v352_v20 = vsel %vm339_vm0, %v327_v16, 0.0  ;;  %v361_v25 = vsel %vm339_vm0, %v330_v21, 0.0  ;;  %v358_v26 = vsel %vm339_vm0, %v329_v22, 0.0  ;;  %v389_v49 = vld [vmem:[%s1806_s3 + $0x8] sm:$0xff]  ;;  %v1270_v50 = vld [vmem:[%s1226_s27 + $0x20] sm:$0xff] }
  0x17   : > { %v332_v27 = vmul.f32 %v1176_v4, %v310_v23  ;;  %v331_v28 = vmul.f32 %v1176_v4, %v309_v24  ;;  %v334_v33 = vmul.f32 %v1176_v4, %v312_v29  ;;  %v333_v34 = vmul.f32 %v1176_v4, %v311_v30  ;;  %v1273_v51 = vld [vmem:[%s1226_s27 + $0x28] sm:$0xff]  ;;  %v388_v52 = vld [vmem:[%s1806_s3] sm:$0xff]  ;;  %v391_v55 = vld [vmem:[%s1806_s3 + $0x18] sm:$0xff] }
  0x18   : > { %v336_v40 = vmul.f32 %v1176_v4, %v314_v35  ;;  %v335_v41 = vmul.f32 %v1176_v4, %v313_v36  ;;  %v503_v53 = vadd.f32 %v1250_v42, %v1239_v37  ;;  %v500_v54 = vadd.f32 %v1256_v44, %v1253_v43  ;;  %v390_v56 = vld [vmem:[%s1806_s3 + $0x10] sm:$0xff]  ;;  %v393_v61 = vld [vmem:[%s1806_s3 + $0x28] sm:$0xff]  ;;  %v392_v62 = vld [vmem:[%s1806_s3 + $0x20] sm:$0xff] }
  0x19   : > { %v367_v31 = vsel %vm339_vm0, %v332_v27, 0.0  ;;  %v364_v32 = vsel %vm339_vm0, %v331_v28, 0.0  ;;  %v373_v45 = vsel %vm339_vm0, %v334_v33, 0.0  ;;  %v370_v46 = vsel %vm339_vm0, %v333_v34, 0.0  ;;  %v395_v3 = vld [vmem:[%s1806_s3 + $0x38] sm:$0xff]  ;;  %v394_v5 = vld [vmem:[%s1806_s3 + $0x30] sm:$0xff] }
  0x1a   : > { %350 = vadd.xlane.f32.xlu1 %v349_v13  ;;  %344 = vadd.xlane.f32.xlu0 %v343_v14  ;;  %v379_v57 = vsel %vm339_vm0, %v336_v40, 0.0  ;;  %v376_v58 = vsel %vm339_vm0, %v335_v41, 0.0  ;;  %v338_v59 = vmul.f32 %v1176_v4, %v316_v38  ;;  %v337_v60 = vmul.f32 %v1176_v4, %v315_v39  ;;  %v397_v10 = vld [vmem:[%s1806_s3 + $0x48] sm:$0xff]  ;;  %v396_v11 = vld [vmem:[%s1806_s3 + $0x40] sm:$0xff]  ;;  %v399_v16 = vld [vmem:[%s1806_s3 + $0x58] sm:$0xff] }
  0x1b   : > { %v509_v63 = vadd.f32 %v1264_v48, %v1261_v47  ;;  %v506_v0 = vadd.f32 %v1273_v51, %v1270_v50  ;;  %v405_v1 = vmul.f32 %v1176_v4, %v389_v49  ;;  %v404_v2 = vmul.f32 %v1176_v4, %v388_v52  ;;  %v398_v17 = vld [vmem:[%s1806_s3 + $0x50] sm:$0xff]  ;;  %v401_v22 = vld [vmem:[%s1806_s3 + $0x68] sm:$0xff]  ;;  %v400_v23 = vld [vmem:[%s1806_s3 + $0x60] sm:$0xff] }
  0x1c   : > { %v1311_v6 = vsel %vm339_vm0, %v338_v59, 0.0  ;;  %v1314_v7 = vsel %vm339_vm0, %v337_v60, 0.0  ;;  %v407_v8 = vmul.f32 %v1176_v4, %v391_v55  ;;  %v406_v9 = vmul.f32 %v1176_v4, %v390_v56  ;;  %v403_v28 = vld [vmem:[%s1806_s3 + $0x78] sm:$0xff]  ;;  %v402_v29 = vld [vmem:[%s1806_s3 + $0x70] sm:$0xff]  ;;  %v1397_v52 = vld [vmem:[%s1226_s27 + $0x40] sm:$0xff] }
  0x1d   : > { %v1325_v12 = vsel %vm339_vm0, %v405_v1, 0.0  ;;  %v1328_v13 = vsel %vm339_vm0, %v404_v2, 0.0  ;;  %v409_v14 = vmul.f32 %v1176_v4, %v393_v61  ;;  %v408_v15 = vmul.f32 %v1176_v4, %v392_v62  ;;  %v1383_v39 = vld [vmem:[%s1226_s27 + $0x50] sm:$0xff]  ;;  %v1394_v49 = vld [vmem:[%s1226_s27 + $0x58] sm:$0xff]  ;;  %v1425_v61 = vld [vmem:[%s1226_s27 + $0x60] sm:$0xff] }
  0x1e   : > { %356 = vadd.xlane.f32.xlu1 %v355_v19  ;;  %353 = vadd.xlane.f32.xlu0 %v352_v20  ;;  %v1339_v18 = vsel %vm339_vm0, %v407_v8, 0.0  ;;  %v1342_v19 = vsel %vm339_vm0, %v406_v9, 0.0  ;;  %v411_v20 = vmul.f32 %v1176_v4, %v395_v3  ;;  %v410_v21 = vmul.f32 %v1176_v4, %v394_v5  ;;  %v1419_v59 = vld [vmem:[%s1226_s27 + $0x70] sm:$0xff]  ;;  %v1422_v60 = vld [vmem:[%s1226_s27 + $0x78] sm:$0xff]  ;;  %1828 = vst [vmem:[#allocation2_spill] sm:$0xff] %v1425_v61  ;;  %v1428_v62 = vld [vmem:[%s1226_s27 + $0x68] sm:$0xff] }
  0x1f   : > { %v1353_v24 = vsel %vm339_vm0, %v409_v14, 0.0  ;;  %v412_v27 = vmul.f32 %v1176_v4, %v396_v11  ;;  %v414_v33 = vmul.f32 %v1176_v4, %v398_v17  ;;  %v417_v36 = vmul.f32 %v1176_v4, %v401_v22  ;;  %1829 = vst [vmem:[#allocation3_spill] sm:$0xff] %v1428_v62  ;;  %v1435_v1 = vld [vmem:[%s1226_s27 + $0x90] sm:$0xff]  ;;  %v1438_v2 = vld [vmem:[%s1226_s27 + $0x98] sm:$0xff]  ;;  %v1441_v3 = vld [vmem:[%s1226_s27 + $0x80] sm:$0xff] }
  0x20   : > { %v1367_v30 = vsel %vm339_vm0, %v411_v20, 0.0  ;;  %v416_v38 = vmul.f32 %v1176_v4, %v400_v23  ;;  %1830 = vst [vmem:[#allocation4_spill] sm:$0xff] %v1435_v1  ;;  %1831 = vst [vmem:[#allocation5_spill] sm:$0xff] %v1438_v2  ;;  %v1444_v5 = vld [vmem:[%s1226_s27 + $0x88] sm:$0xff]  ;;  %v527_v8 = vadd.f32 %v1438_v2, %v1435_v1  ;;  %v1454_v11 = vld [vmem:[%s1226_s27 + $0xb8] sm:$0xff] }
  0x21   : > { %v1378_v35 = vsel %vm339_vm0, %v412_v27, 0.0  ;;  %v1389_v41 = vsel %vm339_vm0, %v414_v33, 0.0  ;;  %1832 = vst [vmem:[#allocation6_spill] sm:$0xff] %v1441_v3  ;;  %1833 = vst [vmem:[#allocation7_spill] sm:$0xff] %v1444_v5  ;;  %v524_v9 = vadd.f32 %v1444_v5, %v1441_v3  ;;  %v1457_v14 = vld [vmem:[%s1226_s27 + $0xa0] sm:$0xff]  ;;  %v1467_v20 = vld [vmem:[%s1226_s27 + $0xd0] sm:$0xff] }
  0x22   : > { %362 = vadd.xlane.f32.xlu1 %v361_v25  ;;  %359 = vadd.xlane.f32.xlu0 %v358_v26  ;;  %v1356_v25 = vsel %vm339_vm0, %v408_v15, 0.0  ;;  %v413_v26 = vmul.f32 %v1176_v4, %v397_v10  ;;  %v1406_v55 = vsel %vm339_vm0, %v416_v38, 0.0  ;;  %v1451_v10 = vld [vmem:[%s1226_s27 + $0xb0] sm:$0xff]  ;;  %1835 = vst [vmem:[#allocation9_spill] sm:$0xff] %v1454_v11  ;;  %1836 = vst [vmem:[#allocation10_spill] sm:$0xff] %v1457_v14  ;;  %v1460_v15 = vld [vmem:[%s1226_s27 + $0xa8] sm:$0xff] }
  0x23   : > { %1834 = vst [vmem:[#allocation8_spill] sm:$0xff] %v1451_v10  ;;  %1837 = vst [vmem:[#allocation11_spill] sm:$0xff] %v1460_v15  ;;  %v530_v17 = vadd.f32 %v1460_v15, %v1457_v14  ;;  %v1473_v22 = vld [vmem:[%s1226_s27 + $0xc0] sm:$0xff]  ;;  %v1476_v23 = vld [vmem:[%s1226_s27 + $0xc8] sm:$0xff]  ;;  %v551_v38 = vmul.f32 %v1250_v42, %v1250_v42 }
  0x24   : > { %v1375_v34 = vsel %vm339_vm0, %v413_v26, 0.0  ;;  %1838 = vst [vmem:[#allocation12_spill] sm:$0xff] %v1467_v20  ;;  %1840 = vst [vmem:[#allocation14_spill] sm:$0xff] %v1473_v22  ;;  %v536_v27 = vadd.f32 %v1476_v23, %v1473_v22  ;;  %v1492_v33 = vld [vmem:[%s1226_s27 + $0xe8] sm:$0xff] }
  0x25   : > { %1841 = vst [vmem:[#allocation15_spill] sm:$0xff] %v1476_v23  ;;  %1845 = vst [vmem:[#allocation19_spill] sm:$0xff] %v1492_v33 }
  0x26   : > { %368 = vadd.xlane.f32.xlu1 %v367_v31  ;;  %365 = vadd.xlane.f32.xlu0 %v364_v32  ;;  %v1370_v31 = vsel %vm339_vm0, %v410_v21, 0.0  ;;  %v415_v32 = vmul.f32 %v1176_v4, %v399_v16  ;;  %v533_v16 = vadd.f32 %v1454_v11, %v1451_v10  ;;  %v1470_v21 = vld [vmem:[%s1226_s27 + $0xd8] sm:$0xff] }
  0x27   : > { %1839 = vst [vmem:[#allocation13_spill] sm:$0xff] %v1470_v21  ;;  %v539_v26 = vadd.f32 %v1470_v21, %v1467_v20 }
  0x28   : > { %v1386_v40 = vsel %vm339_vm0, %v415_v32, 0.0  ;;  %v1489_v32 = vld [vmem:[%s1226_s27 + $0xe0] sm:$0xff] }
  0x29   : > { %1844 = vst [vmem:[#allocation18_spill] sm:$0xff] %v1489_v32 }
  0x2a   : > { %374 = vadd.xlane.f32.xlu1 %v373_v45  ;;  %371 = vadd.xlane.f32.xlu0 %v370_v46  ;;  %v419_v45 = vmul.f32 %v1176_v4, %v403_v28  ;;  %v418_v46 = vmul.f32 %v1176_v4, %v402_v29  ;;  %v1483_v28 = vld [vmem:[%s1226_s27 + $0xf0] sm:$0xff]  ;;  %v1486_v29 = vld [vmem:[%s1226_s27 + $0xf8] sm:$0xff] }
  0x2b   : > { %1842 = vst [vmem:[#allocation16_spill] sm:$0xff] %v1483_v28  ;;  %1843 = vst [vmem:[#allocation17_spill] sm:$0xff] %v1486_v29 }
  0x2c   : > { %v1409_v56 = vsel %vm339_vm0, %v419_v45, 0.0  ;;  %v1412_v4 = vsel %vm339_vm0, %v418_v46, 0.0  ;;  %v548_v45 = vmul.f32 %v1253_v43, %v1253_v43  ;;  %v545_v46 = vadd.f32 %v1486_v29, %v1483_v28 }
  0x2e   : > { %380 = vadd.xlane.f32.xlu1 %v379_v57  ;;  %377 = vadd.xlane.f32.xlu0 %v376_v58  ;;  %v515_v57 = vadd.f32 %v1394_v49, %v1383_v39 }
  0x32   : > { %504 = vadd.xlane.f32.xlu1 %v503_v53  ;;  %501 = vadd.xlane.f32.xlu0 %v500_v54  ;;  %v1400_v53 = vld [vmem:[%s1226_s27 + $0x48] sm:$0xff]  ;;  %v1403_v54 = vsel %vm339_vm0, %v417_v36, 0.0  ;;  %v550_v36 = vmul.f32 %v1239_v37, %v1239_v37 }
  0x33   : > { %v512_v58 = vadd.f32 %v1400_v53, %v1397_v52 }
  0x36   : > { %510 = vadd.xlane.f32.xlu1 %v509_v63  ;;  %507 = vadd.xlane.f32.xlu0 %v506_v0  ;;  %v521_v63 = vadd.f32 %v1422_v60, %v1419_v59  ;;  %v518_v0 = vadd.f32 %v1428_v62, %v1425_v61 }
  0x3a   : > { %516 = vadd.xlane.f32.xlu1 %v515_v57  ;;  %513 = vadd.xlane.f32.xlu0 %v512_v58  ;;  %v542_v57 = vadd.f32 %v1492_v33, %v1489_v32  ;;  %v549_v58 = vmul.f32 %v1256_v44, %v1256_v44 }
  0x3e   : > { %522 = vadd.xlane.f32.xlu1 %v521_v63  ;;  %519 = vadd.xlane.f32.xlu0 %v518_v0  ;;  %v583_v63 = vadd.f32 %v551_v38, %v550_v36  ;;  %v554_v0 = vmul.f32 %v1261_v47, %v1261_v47  ;;  %v559_v36 = vmul.f32 %v1394_v49, %v1394_v49 }
  0x42   : > { %528 = vadd.xlane.f32.xlu1 %v527_v8  ;;  %525 = vadd.xlane.f32.xlu0 %v524_v9  ;;  %v555_v8 = vmul.f32 %v1264_v48, %v1264_v48  ;;  %v580_v9 = vadd.f32 %v549_v58, %v548_v45  ;;  %v557_v45 = vmul.f32 %v1400_v53, %v1400_v53 }
  0x43   : > { %v562_v58 = vmul.f32 %v1419_v59, %v1419_v59 }
  0x46   : > { %534 = vadd.xlane.f32.xlu1 %v533_v16  ;;  %531 = vadd.xlane.f32.xlu0 %v530_v17  ;;  %v552_v16 = vmul.f32 %v1270_v50, %v1270_v50  ;;  %v553_v17 = vmul.f32 %v1273_v51, %v1273_v51 }
  0x48   : > { %v586_v38 = vadd.f32 %v553_v17, %v552_v16  ;;  %v566_v17 = vmul.f32 %v1435_v1, %v1435_v1 }
  0x4a   : > { %540 = vadd.xlane.f32.xlu1 %v539_v26  ;;  %537 = vadd.xlane.f32.xlu0 %v536_v27  ;;  %v589_v26 = vadd.f32 %v555_v8, %v554_v0  ;;  %v558_v27 = vmul.f32 %v1383_v39, %v1383_v39  ;;  %v563_v0 = vmul.f32 %v1422_v60, %v1422_v60 }
  0x4c   : > { %v601_v16 = vadd.f32 %v563_v0, %v562_v58  ;;  %v571_v58 = vmul.f32 %v1454_v11, %v1454_v11 }
  0x4e   : > { %546 = vadd.xlane.f32.xlu1 %v545_v46  ;;  %543 = vadd.xlane.f32.xlu0 %v542_v57  ;;  %v556_v46 = vmul.f32 %v1397_v52, %v1397_v52  ;;  %v595_v57 = vadd.f32 %v559_v36, %v558_v27  ;;  %v567_v27 = vmul.f32 %v1438_v2, %v1438_v2 }
  0x50   : > { %v592_v8 = vadd.f32 %v557_v45, %v556_v46  ;;  %v607_v46 = vadd.f32 %v567_v27, %v566_v17  ;;  %v570_v45 = vmul.f32 %v1451_v10, %v1451_v10  ;;  %v575_v17 = vmul.f32 %v1470_v21, %v1470_v21 }
  0x52   : > { %584 = vadd.xlane.f32.xlu1 %v583_v63  ;;  %581 = vadd.xlane.f32.xlu0 %v580_v9  ;;  %v560_v63 = vmul.f32 %v1425_v61, %v1425_v61  ;;  %v561_v9 = vmul.f32 %v1428_v62, %v1428_v62 }
  0x54   : > { %v598_v36 = vadd.f32 %v561_v9, %v560_v63  ;;  %v613_v63 = vadd.f32 %v571_v58, %v570_v45  ;;  %v574_v9 = vmul.f32 %v1467_v20, %v1467_v20  ;;  %v579_v45 = vmul.f32 %v1486_v29, %v1486_v29 }
  0x56   : > { %590 = vadd.xlane.f32.xlu1 %v589_v26  ;;  %587 = vadd.xlane.f32.xlu0 %v586_v38  ;;  %v564_v26 = vmul.f32 %v1441_v3, %v1441_v3  ;;  %v565_v38 = vmul.f32 %v1444_v5, %v1444_v5 }
  0x58   : > { %v604_v0 = vadd.f32 %v565_v38, %v564_v26  ;;  %v619_v26 = vadd.f32 %v575_v17, %v574_v9  ;;  %v578_v38 = vmul.f32 %v1483_v28, %v1483_v28 }
  0x5a   : > { %596 = vadd.xlane.f32.xlu1 %v595_v57  ;;  %593 = vadd.xlane.f32.xlu0 %v592_v8  ;;  %v568_v57 = vmul.f32 %v1457_v14, %v1457_v14  ;;  %v569_v8 = vmul.f32 %v1460_v15, %v1460_v15 }
  0x5c   : > { %v610_v27 = vadd.f32 %v569_v8, %v568_v57  ;;  %v625_v57 = vadd.f32 %v579_v45, %v578_v38 }
  0x5e   : > { %602 = vadd.xlane.f32.xlu1 %v601_v16  ;;  %599 = vadd.xlane.f32.xlu0 %v598_v36  ;;  %v572_v16 = vmul.f32 %v1473_v22, %v1473_v22  ;;  %v573_v36 = vmul.f32 %v1476_v23, %v1476_v23 }
  0x60   : > { %v616_v58 = vadd.f32 %v573_v36, %v572_v16 }
  0x62   : > { %608 = vadd.xlane.f32.xlu1 %v607_v46  ;;  %605 = vadd.xlane.f32.xlu0 %v604_v0  ;;  %v576_v46 = vmul.f32 %v1489_v32, %v1489_v32  ;;  %v577_v0 = vmul.f32 %v1492_v33, %v1492_v33 }
  0x64   : > { %v622_v8 = vadd.f32 %v577_v0, %v576_v46 }
  0x66   : > { %614 = vadd.xlane.f32.xlu1 %v613_v63  ;;  %611 = vadd.xlane.f32.xlu0 %v610_v27 }
  0x6a   : > { %620 = vadd.xlane.f32.xlu1 %v619_v26  ;;  %617 = vadd.xlane.f32.xlu0 %v616_v58 }
  0x6e   : > { %626 = vadd.xlane.f32.xlu1 %v625_v57  ;;  %623 = vadd.xlane.f32.xlu0 %v622_v8 }
  0x72   : > { %386 = vadd.xlane.f32.xlu1 %v1311_v6  ;;  %383 = vadd.xlane.f32.xlu0 %v1314_v7 }
  0x76   : > { %424 = vadd.xlane.f32.xlu1 %v1325_v12  ;;  %421 = vadd.xlane.f32.xlu0 %v1328_v13 }
  0x7a   : > { %430 = vadd.xlane.f32.xlu1 %v1339_v18  ;;  %427 = vadd.xlane.f32.xlu0 %v1342_v19 }
  0x7e   : > { %436 = vadd.xlane.f32.xlu1 %v1353_v24  ;;  %433 = vadd.xlane.f32.xlu0 %v1356_v25 }
  0x82   : > { %442 = vadd.xlane.f32.xlu1 %v1367_v30  ;;  %439 = vadd.xlane.f32.xlu0 %v1370_v31 }
  0x86   : > { %448 = vadd.xlane.f32.xlu1 %v1375_v34  ;;  %445 = vadd.xlane.f32.xlu0 %v1378_v35 }
  0x8a   : > { %454 = vadd.xlane.f32.xlu1 %v1386_v40  ;;  %451 = vadd.xlane.f32.xlu0 %v1389_v41 }
  0x8e   : > { %460 = vadd.xlane.f32.xlu1 %v1403_v54  ;;  %457 = vadd.xlane.f32.xlu0 %v1406_v55 }
  0x92   : > { %466 = vadd.xlane.f32.xlu1 %v1409_v56  ;;  %463 = vadd.xlane.f32.xlu0 %v1412_v4 }
  0xa3   : > { %v1580_v6 = vpop.xlane.xlu1 %347  ;;  %v1582_v7 = vpop.xlane.xlu0 %341 }
  0xa7   : > { %v1584_v12 = vpop.xlane.xlu1 %350  ;;  %v1586_v13 = vpop.xlane.xlu0 %344 }
  0xab   : > { %v1588_v18 = vpop.xlane.xlu1 %356  ;;  %v1590_v19 = vpop.xlane.xlu0 %353 }
  0xaf   : > { %v1592_v24 = vpop.xlane.xlu1 %362  ;;  %v1594_v25 = vpop.xlane.xlu0 %359 }
  0xb3   : > { %v1596_v30 = vpop.xlane.xlu1 %368  ;;  %v1598_v31 = vpop.xlane.xlu0 %365 }
  0xb7   : > { %v1600_v34 = vpop.xlane.xlu1 %374  ;;  %v1602_v35 = vpop.xlane.xlu0 %371 }
  0xb8   : > { %1846 = vst [vmem:[#allocation20_spill] sm:$0xff] %v1600_v34  ;;  %1847 = vst [vmem:[#allocation21_spill] sm:$0xff] %v1602_v35 }
  0xbb   : > { %v1604_v40 = vpop.xlane.xlu1 %380  ;;  %v1606_v41 = vpop.xlane.xlu0 %377 }
  0xbc   : > { %1848 = vst [vmem:[#allocation22_spill] sm:$0xff] %v1604_v40  ;;  %1849 = vst [vmem:[#allocation23_spill] sm:$0xff] %v1606_v41 }
  0xbf   : > { %v505_v54 = vpop.xlane.xlu1 %504  ;;  %v502_v55 = vpop.xlane.xlu0 %501 }
  0xc0   : > { %v1618_v57 = vmul.f32 0.00390625, %v505_v54  ;;  %v1620_v8 = vmul.f32 0.00390625, %v502_v55 }
  0xc2   : > { %v661_v28 = vmul.f32 %v1618_v57, %v1618_v57  ;;  %v660_v20 = vmul.f32 %v1620_v8, %v1620_v8 }
  0xc3   : > { %v511_v56 = vpop.xlane.xlu1 %510  ;;  %v508_v4 = vpop.xlane.xlu0 %507 }
  0xc4   : > { %v1622_v33 = vmul.f32 0.00390625, %v511_v56  ;;  %v1626_v21 = vmul.f32 0.00390625, %v508_v4 }
  0xc6   : > { %v663_v54 = vmul.f32 %v1622_v33, %v1622_v33 }
  0xc7   : > { %v517_v63 = vpop.xlane.xlu1 %516  ;;  %v514_v9 = vpop.xlane.xlu0 %513 }
  0xc8   : > { %v1632_v56 = vmul.f32 0.00390625, %v517_v63  ;;  %v1636_v4 = vmul.f32 0.00390625, %v514_v9 }
  0xca   : > { %v665_v2 = vmul.f32 %v1632_v56, %v1632_v56 }
  0xcb   : > { %v523_v17 = vpop.xlane.xlu1 %522  ;;  %v520_v27 = vpop.xlane.xlu0 %519 }
  0xcc   : > { %v1638_v5 = vmul.f32 0.00390625, %v523_v17 }
  0xcf   : > { %v529_v16 = vpop.xlane.xlu1 %528  ;;  %v526_v36 = vpop.xlane.xlu0 %525 }
  0xd3   : > { %v535_v26 = vpop.xlane.xlu1 %534  ;;  %v1608_v38 = vpop.xlane.xlu0 %531 }
  0xd7   : > { %v1610_v45 = vpop.xlane.xlu1 %540  ;;  %v1612_v58 = vpop.xlane.xlu0 %537 }
  0xdb   : > { %v1614_v46 = vpop.xlane.xlu1 %546  ;;  %v1616_v0 = vpop.xlane.xlu0 %543 }
  0xdf   : > { %v585_v32 = vpop.xlane.xlu1 %584  ;;  %v582_v29 = vpop.xlane.xlu0 %581 }
  0xe0   : > { %v645_v23 = vmul.f32 0.00390625, %v585_v32  ;;  %v644_v22 = vmul.f32 0.00390625, %v582_v29  ;;  %v662_v32 = vmul.f32 %v1626_v21, %v1626_v21 }
  0xe2   : > { %v677_v15 = vsub.f32 %v645_v23, %v661_v28  ;;  %v676_v11 = vsub.f32 %v644_v22, %v660_v20  ;;  %v1642_v20 = vmul.f32 0.00390625, %v520_v27 }
  0xe3   : > { %v591_v55 = vpop.xlane.xlu1 %590  ;;  %v588_v14 = vpop.xlane.xlu0 %587 }
  0xe4   : > { %v647_v10 = vmul.f32 0.00390625, %v591_v55  ;;  %v646_v41 = vmul.f32 0.00390625, %v588_v14  ;;  %v693_v29 = vmax.f32 %v677_v15, 0.0  ;;  %v692_v63 = vmax.f32 %v676_v11, 0.0 }
  0xe5   : > { %v664_v15 = vmul.f32 %v1636_v4, %v1636_v4  ;;  %v666_v27 = vmul.f32 %v1642_v20, %v1642_v20 }
  0xe6   : > { %v679_v40 = vsub.f32 %v647_v10, %v663_v54  ;;  %v678_v23 = vsub.f32 %v646_v41, %v662_v32  ;;  %v709_v14 = vadd.f32 1e-05, %v693_v29  ;;  %v667_v10 = vmul.f32 %v1638_v5, %v1638_v5 }
  0xe7   : > { %v597_v28 = vpop.xlane.xlu1 %596  ;;  %v594_v3 = vpop.xlane.xlu0 %593  ;;  %v708_v32 = vadd.f32 1e-05, %v692_v63  ;;  %v1650_v29 = vmul.f32 0.00390625, %v529_v16  ;;  %v1659_v16 = vmul.f32 0.00390625, %v1608_v38 }
  0xe8   : > { %v649_v1 = vmul.f32 0.00390625, %v597_v28  ;;  %v695_v22 = vmax.f32 %v679_v40, 0.0  ;;  %v648_v55 = vmul.f32 0.00390625, %v594_v3  ;;  %v694_v9 = vmax.f32 %v678_v23, 0.0 }
  0xe9   : > { %1059 = vrsqrt.f32 %v709_v14  ;;  %v1652_v40 = vmul.f32 0.00390625, %v526_v36  ;;  %v1654_v28 = vmul.f32 0.00390625, %v535_v26 }
  0xea   : > { %v681_v41 = vsub.f32 %v649_v1, %v665_v2  ;;  %v680_v35 = vsub.f32 %v648_v55, %v664_v15  ;;  %v711_v3 = vadd.f32 1e-05, %v695_v22  ;;  %v710_v23 = vadd.f32 1e-05, %v694_v9 }
  0xeb   : > { %v603_v17 = vpop.xlane.xlu1 %602  ;;  %v600_v54 = vpop.xlane.xlu0 %599  ;;  %1061 = vrsqrt.f32 %v708_v32  ;;  %v668_v26 = vmul.f32 %v1652_v40, %v1652_v40 }
  0xec   : > { %v651_v34 = vmul.f32 0.00390625, %v603_v17  ;;  %v650_v11 = vmul.f32 0.00390625, %v600_v54  ;;  %v697_v1 = vmax.f32 %v681_v41, 0.0  ;;  %v696_v55 = vmax.f32 %v680_v35, 0.0 }
  0xed   : > { %v669_v17 = vmul.f32 %v1650_v29, %v1650_v29  ;;  %1063 = vrsqrt.f32 %v711_v3  ;;  %v1671_v3 = vmul.f32 0.00390625, %v1612_v58  ;;  %v1678_v58 = vmul.f32 0.00390625, %v1614_v46 }
  0xee   : > { %v683_v62 = vsub.f32 %v651_v34, %v667_v10  ;;  %v682_v2 = vsub.f32 %v650_v11, %v666_v27  ;;  %v671_v34 = vmul.f32 %v1654_v28, %v1654_v28  ;;  %1065 = vrsqrt.f32 %v710_v23 }
  0xef   : > { %v609_v61 = vpop.xlane.xlu1 %608  ;;  %v606_v63 = vpop.xlane.xlu0 %605  ;;  %v713_v22 = vadd.f32 1e-05, %v697_v1  ;;  %v712_v41 = vadd.f32 1e-05, %v696_v55  ;;  %v670_v11 = vmul.f32 %v1659_v16, %v1659_v16  ;;  %v1668_v27 = vmul.f32 0.00390625, %v1610_v45  ;;  %1851 = vst [vmem:[#allocation25_spill] sm:$0xff] %v1671_v3 }
  0xf0   : > { %v653_v15 = vmul.f32 0.00390625, %v609_v61  ;;  %v652_v36 = vmul.f32 0.00390625, %v606_v63  ;;  %v699_v14 = vmax.f32 %v683_v62, 0.0  ;;  %v698_v10 = vmax.f32 %v682_v2, 0.0 }
  0xf1   : > { %1850 = vst [vmem:[#allocation24_spill] sm:$0xff] %v1668_v27  ;;  %1067 = vrsqrt.f32 %v713_v22  ;;  %v672_v45 = vmul.f32 %v1671_v3, %v1671_v3  ;;  %v1681_v22 = vmul.f32 0.00390625, %v1616_v0  ;;  %v675_v0 = vmul.f32 %v1678_v58, %v1678_v58 }
  0xf2   : > { %v685_v35 = vsub.f32 %v653_v15, %v669_v17  ;;  %v684_v54 = vsub.f32 %v652_v36, %v668_v26  ;;  %v715_v62 = vadd.f32 1e-05, %v699_v14  ;;  %v714_v2 = vadd.f32 1e-05, %v698_v10 }
  0xf3   : > { %v615_v61 = vpop.xlane.xlu1 %614  ;;  %v612_v9 = vpop.xlane.xlu0 %611  ;;  %1069 = vrsqrt.f32 %v712_v41 }
  0xf4   : > { %v655_v32 = vmul.f32 0.00390625, %v615_v61  ;;  %v654_v38 = vmul.f32 0.00390625, %v612_v9  ;;  %v1060_v1 = vpop.eup %1059  ;;  %v701_v63 = vmax.f32 %v685_v35, 0.0  ;;  %v700_v36 = vmax.f32 %v684_v54, 0.0 }
  0xf5   : > { %v673_v61 = vmul.f32 %v1668_v27, %v1668_v27  ;;  %v1062_v14 = vpop.eup %1061  ;;  %1071 = vrsqrt.f32 %v715_v62  ;;  %v741_v35 = vmul.f32 %v1060_v1, %v1586_v13  ;;  %v674_v13 = vmul.f32 %v1681_v22, %v1681_v22 }
  0xf6   : > { %v687_v23 = vsub.f32 %v655_v32, %v671_v34  ;;  %v686_v15 = vsub.f32 %v654_v38, %v670_v11  ;;  %1073 = vrsqrt.f32 %v714_v2  ;;  %v717_v41 = vadd.f32 1e-05, %v701_v63 }
  0xf7   : > { %v621_v55 = vpop.xlane.xlu1 %620  ;;  %v618_v17 = vpop.xlane.xlu0 %617  ;;  %v740_v62 = vmul.f32 %v1062_v14, %v1582_v7  ;;  %v790_v14 = vmul.f32 %v741_v35, %v1239_v37 }
  0xf8   : > { %v657_v26 = vmul.f32 0.00390625, %v621_v55  ;;  %v656_v34 = vmul.f32 0.00390625, %v618_v17  ;;  %v703_v10 = vmax.f32 %v687_v23, 0.0  ;;  %v1064_v9 = vpop.eup %1063  ;;  %v702_v54 = vmax.f32 %v686_v15, 0.0 }
  0xf9   : > { %v716_v55 = vadd.f32 1e-05, %v700_v36  ;;  %v1066_v17 = vpop.eup %1065  ;;  %v743_v1 = vmul.f32 %v1064_v9, %v1584_v12  ;;  %1075 = vrsqrt.f32 %v717_v41  ;;  %v756_v12 = vmul.f32 %v740_v62, %v1620_v8 }
  0xfa   : > { %v689_v32 = vsub.f32 %v657_v26, %v673_v61  ;;  %v688_v3 = vsub.f32 %v656_v34, %v672_v45  ;;  %v719_v23 = vadd.f32 1e-05, %v703_v10  ;;  %v718_v2 = vadd.f32 1e-05, %v702_v54 }
  0xfb   : > { %v627_v38 = vpop.xlane.xlu1 %626  ;;  %v624_v11 = vpop.xlane.xlu0 %623  ;;  %1077 = vrsqrt.f32 %v716_v55  ;;  %v757_v34 = vmul.f32 %v741_v35, %v1618_v57  ;;  %v791_v10 = vmul.f32 %v741_v35, %v1250_v42  ;;  %v742_v9 = vmul.f32 %v1066_v17, %v1580_v6 }
  0xfc   : > { %v659_v46 = vmul.f32 0.00390625, %v627_v38  ;;  %v658_v27 = vmul.f32 0.00390625, %v624_v11  ;;  %v705_v63 = vmax.f32 %v689_v32, 0.0  ;;  %v704_v61 = vmax.f32 %v688_v3, 0.0  ;;  %v1068_v7 = vpop.eup %1067 }
  0xfd   : > { %v1070_v41 = vpop.eup %1069  ;;  %1079 = vrsqrt.f32 %v719_v23  ;;  %v788_v54 = vmul.f32 %v740_v62, %v1253_v43  ;;  %v789_v32 = vmul.f32 %v740_v62, %v1256_v44  ;;  %v794_v42 = vmul.f32 %v743_v1, %v1261_v47 }
  0xfe   : > { %v691_v15 = vsub.f32 %v659_v46, %v675_v0  ;;  %v690_v45 = vsub.f32 %v658_v27, %v674_v13  ;;  %v759_v27 = vmul.f32 %v743_v1, %v1622_v33  ;;  %1081 = vrsqrt.f32 %v718_v2 }
  0xff   : > { %v1690_v36 = vpop.xlane.xlu1 %386  ;;  %v1692_v26 = vpop.xlane.xlu0 %383  ;;  %v721_v57 = vadd.f32 1e-05, %v705_v63  ;;  %v720_v8 = vadd.f32 1e-05, %v704_v61  ;;  %v795_v43 = vmul.f32 %v743_v1, %v1264_v48  ;;  %v758_v44 = vmul.f32 %v742_v9, %v1626_v21 }
 0x100   : > { %v707_v3 = vmax.f32 %v691_v15, 0.0  ;;  %v1072_v35 = vpop.eup %1071  ;;  %v706_v11 = vmax.f32 %v690_v45, 0.0  ;;  %v745_v47 = vmul.f32 %v1068_v7, %v1588_v18  ;;  %v744_v33 = vmul.f32 %v1070_v41, %v1590_v19 }
 0x101   : > { %v1074_v46 = vpop.eup %1073  ;;  %1083 = vrsqrt.f32 %v721_v57  ;;  %v792_v63 = vmul.f32 %v742_v9, %v1270_v50  ;;  %v793_v48 = vmul.f32 %v742_v9, %v1273_v51 }
 0x102   : > { %v723_v23 = vadd.f32 1e-05, %v707_v3  ;;  %1085 = vrsqrt.f32 %v720_v8  ;;  %v722_v21 = vadd.f32 1e-05, %v706_v11  ;;  %v761_v61 = vmul.f32 %v745_v47, %v1632_v56 }
 0x103   : > { %v425_v38 = vpop.xlane.xlu1 %424  ;;  %v422_v37 = vpop.xlane.xlu0 %421  ;;  %v760_v45 = vmul.f32 %v744_v33, %v1636_v4  ;;  %v746_v50 = vmul.f32 %v1074_v46, %v1594_v25  ;;  %v798_v9 = vmul.f32 %v745_v47, %v1383_v39  ;;  %v799_v56 = vmul.f32 %v745_v47, %v1394_v49 }
 0x104   : > { %v773_v6 = vsub.f32 %v425_v38, %v757_v34  ;;  %v772_v55 = vsub.f32 %v422_v37, %v756_v12  ;;  %v1076_v15 = vpop.eup %1075  ;;  %v747_v34 = vmul.f32 %v1072_v35, %v1592_v24  ;;  %1087 = vrsqrt.f32 %v723_v23 }
 0x105   : > { %v1078_v51 = vpop.eup %1077  ;;  %v796_v4 = vmul.f32 %v744_v33, %v1397_v52  ;;  %1089 = vrsqrt.f32 %v722_v21  ;;  %v762_v52 = vmul.f32 %v746_v50, %v1642_v20  ;;  %v749_v57 = vmul.f32 %v1076_v15, %v1596_v30  ;;  %v1852_v20 = vld [vmem:[#allocation2_spill] sm:$0xff]  ;;  %v1853_v30 = vld [vmem:[#allocation3_spill] sm:$0xff] }
 0x106   : > { %v822_v17 = vadd.f32 %v790_v14, %v773_v6  ;;  %v823_v0 = vadd.f32 %v791_v10, %v773_v6  ;;  %v820_v62 = vadd.f32 %v788_v54, %v772_v55  ;;  %v821_v13 = vadd.f32 %v789_v32, %v772_v55 }
 0x107   : > { %v431_v2 = vpop.xlane.xlu1 %430  ;;  %v428_v1 = vpop.xlane.xlu0 %427  ;;  %v797_v32 = vmul.f32 %v744_v33, %v1400_v53  ;;  %v763_v49 = vmul.f32 %v747_v34, %v1638_v5  ;;  %v748_v3 = vmul.f32 %v1078_v51, %v1598_v31  ;;  %v802_v8 = vmul.f32 %v747_v34, %v1419_v59  ;;  %v1855_v33 = vld [vmem:[#allocation21_spill] sm:$0xff] }
 0x108   : > { %854 = vst [vmem:[%s1708_s29 + $0x10] sm:$0xff] %v822_v17  ;;  %855 = vst [vmem:[%s1708_s29 + $0x18] sm:$0xff] %v823_v0  ;;  %v775_v18 = vsub.f32 %v431_v2, %v759_v27  ;;  %v774_v19 = vsub.f32 %v428_v1, %v758_v44  ;;  %v1080_v24 = vpop.eup %1079  ;;  %v803_v53 = vmul.f32 %v747_v34, %v1422_v60  ;;  %v1854_v44 = vld [vmem:[#allocation20_spill] sm:$0xff]  ;;  %v1857_v1 = vld [vmem:[#allocation5_spill] sm:$0xff] }
 0x109   : > { %852 = vst [vmem:[%s1708_s29] sm:$0xff] %v820_v62  ;;  %853 = vst [vmem:[%s1708_s29 + $0x8] sm:$0xff] %v821_v13  ;;  %v1082_v39 = vpop.eup %1081  ;;  %v800_v55 = vmul.f32 %v746_v50, %v1852_v20  ;;  %v801_v46 = vmul.f32 %v746_v50, %v1853_v30  ;;  %v765_v59 = vmul.f32 %v749_v57, %v1650_v29 }
 0x10a   : > { %v826_v7 = vadd.f32 %v794_v42, %v775_v18  ;;  %v827_v14 = vadd.f32 %v795_v43, %v775_v18  ;;  %v824_v10 = vadd.f32 %v792_v63, %v774_v19  ;;  %v825_v12 = vadd.f32 %v793_v48, %v774_v19  ;;  %v1856_v63 = vld [vmem:[#allocation4_spill] sm:$0xff] }
 0x10b   : > { %v437_v41 = vpop.xlane.xlu1 %436  ;;  %v434_v54 = vpop.xlane.xlu0 %433  ;;  %v764_v60 = vmul.f32 %v748_v3, %v1652_v40  ;;  %v751_v47 = vmul.f32 %v1080_v24, %v1854_v44  ;;  %v750_v17 = vmul.f32 %v1082_v39, %v1855_v33  ;;  %v806_v48 = vmul.f32 %v749_v57, %v1856_v63  ;;  %v1858_v40 = vld [vmem:[#allocation6_spill] sm:$0xff]  ;;  %v1871_v33 = vld [vmem:[#allocation15_spill] sm:$0xff] }
 0x10c   : > { %858 = vst [vmem:[%s1708_s29 + $0x30] sm:$0xff] %v826_v7  ;;  %859 = vst [vmem:[%s1708_s29 + $0x38] sm:$0xff] %v827_v14  ;;  %v777_v25 = vsub.f32 %v437_v41, %v761_v61  ;;  %v776_v27 = vsub.f32 %v434_v54, %v760_v45  ;;  %v1084_v43 = vpop.eup %1083  ;;  %v807_v21 = vmul.f32 %v749_v57, %v1857_v1  ;;  %v1859_v61 = vld [vmem:[#allocation7_spill] sm:$0xff]  ;;  %v1860_v14 = vld [vmem:[#allocation22_spill] sm:$0xff] }
 0x10d   : > { %856 = vst [vmem:[%s1708_s29 + $0x20] sm:$0xff] %v824_v10  ;;  %857 = vst [vmem:[%s1708_s29 + $0x28] sm:$0xff] %v825_v12  ;;  %v1086_v0 = vpop.eup %1085  ;;  %v804_v15 = vmul.f32 %v748_v3, %v1858_v40  ;;  %v805_v45 = vmul.f32 %v748_v3, %v1859_v61  ;;  %v767_v51 = vmul.f32 %v751_v47, %v1654_v28  ;;  %v1861_v12 = vld [vmem:[#allocation23_spill] sm:$0xff]  ;;  %v1872_v1 = vld [vmem:[#allocation16_spill] sm:$0xff] }
 0x10e   : > { %v830_v38 = vadd.f32 %v798_v9, %v777_v25  ;;  %v831_v37 = vadd.f32 %v799_v56, %v777_v25  ;;  %v828_v42 = vadd.f32 %v796_v4, %v776_v27  ;;  %v829_v35 = vadd.f32 %v797_v32, %v776_v27  ;;  %v1088_v50 = vpop.eup %1087  ;;  %v1862_v25 = vld [vmem:[#allocation8_spill] sm:$0xff]  ;;  %v1863_v27 = vld [vmem:[#allocation9_spill] sm:$0xff]  ;;  %v1865_v3 = vld [vmem:[#allocation11_spill] sm:$0xff] }
 0x10f   : > { %v443_v11 = vpop.xlane.xlu1 %442  ;;  %v440_v6 = vpop.xlane.xlu0 %439  ;;  %v766_v7 = vmul.f32 %v750_v17, %v1659_v16  ;;  %v753_v10 = vmul.f32 %v1084_v43, %v1860_v14  ;;  %v752_v9 = vmul.f32 %v1086_v0, %v1861_v12  ;;  %v810_v32 = vmul.f32 %v751_v47, %v1862_v25  ;;  %v1864_v16 = vld [vmem:[#allocation10_spill] sm:$0xff]  ;;  %v1869_v43 = vld [vmem:[#allocation13_spill] sm:$0xff]  ;;  %v1875_v61 = vld [vmem:[#allocation19_spill] sm:$0xff] }
 0x110   : > { %862 = vst [vmem:[%s1708_s29 + $0x50] sm:$0xff] %v830_v38  ;;  %863 = vst [vmem:[%s1708_s29 + $0x58] sm:$0xff] %v831_v37  ;;  %v779_v5 = vsub.f32 %v443_v11, %v763_v49  ;;  %v778_v31 = vsub.f32 %v440_v6, %v762_v52  ;;  %v1090_v56 = vpop.eup %1089  ;;  %v811_v39 = vmul.f32 %v751_v47, %v1863_v27  ;;  %v1867_v11 = vld [vmem:[#allocation25_spill] sm:$0xff] }
 0x111   : > { %860 = vst [vmem:[%s1708_s29 + $0x40] sm:$0xff] %v828_v42  ;;  %861 = vst [vmem:[%s1708_s29 + $0x48] sm:$0xff] %v829_v35  ;;  %v808_v57 = vmul.f32 %v750_v17, %v1864_v16  ;;  %v809_v38 = vmul.f32 %v750_v17, %v1865_v3  ;;  %v755_v42 = vmul.f32 %v1088_v50, %v1690_v36 }
 0x112   : > { %v834_v62 = vadd.f32 %v802_v8, %v779_v5  ;;  %v835_v13 = vadd.f32 %v803_v53, %v779_v5  ;;  %v832_v23 = vadd.f32 %v800_v55, %v778_v31  ;;  %v833_v2 = vadd.f32 %v801_v46, %v778_v31  ;;  %v1866_v8 = vld [vmem:[#allocation24_spill] sm:$0xff] }
 0x113   : > { %v449_v18 = vpop.xlane.xlu1 %448  ;;  %v446_v19 = vpop.xlane.xlu0 %445  ;;  %v754_v35 = vmul.f32 %v1090_v56, %v1692_v26  ;;  %v769_v53 = vmul.f32 %v753_v10, %v1866_v8  ;;  %v768_v6 = vmul.f32 %v752_v9, %v1867_v11  ;;  %v1868_v46 = vld [vmem:[#allocation12_spill] sm:$0xff]  ;;  %v1870_v26 = vld [vmem:[#allocation14_spill] sm:$0xff]  ;;  %v813_v17 = vmul.f32 %v752_v9, %v1871_v33 }
 0x114   : > { %866 = vst [vmem:[%s1708_s29 + $0x70] sm:$0xff] %v834_v62  ;;  %867 = vst [vmem:[%s1708_s29 + $0x78] sm:$0xff] %v835_v13  ;;  %v781_v29 = vsub.f32 %v449_v18, %v765_v59  ;;  %v780_v34 = vsub.f32 %v446_v19, %v764_v60  ;;  %v814_v31 = vmul.f32 %v753_v10, %v1868_v46  ;;  %v1873_v18 = vld [vmem:[#allocation17_spill] sm:$0xff] }
 0x115   : > { %864 = vst [vmem:[%s1708_s29 + $0x60] sm:$0xff] %v832_v23  ;;  %865 = vst [vmem:[%s1708_s29 + $0x68] sm:$0xff] %v833_v2  ;;  %v815_v59 = vmul.f32 %v753_v10, %v1869_v43  ;;  %v812_v47 = vmul.f32 %v752_v9, %v1870_v26  ;;  %v771_v62 = vmul.f32 %v755_v42, %v1678_v58 }
 0x116   : > { %v838_v41 = vadd.f32 %v806_v48, %v781_v29  ;;  %v839_v4 = vadd.f32 %v807_v21, %v781_v29  ;;  %v836_v54 = vadd.f32 %v804_v15, %v780_v34  ;;  %v837_v24 = vadd.f32 %v805_v45, %v780_v34 }
 0x117   : > { %v455_v49 = vpop.xlane.xlu1 %454  ;;  %v452_v52 = vpop.xlane.xlu0 %451  ;;  %v770_v13 = vmul.f32 %v754_v35, %v1681_v22  ;;  %v818_v21 = vmul.f32 %v755_v42, %v1872_v1  ;;  %v819_v19 = vmul.f32 %v755_v42, %v1873_v18  ;;  %v1874_v22 = vld [vmem:[#allocation18_spill] sm:$0xff]  ;;  %v817_v45 = vmul.f32 %v754_v35, %v1875_v61 }
 0x118   : > { %870 = vst [vmem:[%s1708_s29 + $0x90] sm:$0xff] %v838_v41  ;;  %871 = vst [vmem:[%s1708_s29 + $0x98] sm:$0xff] %v839_v4  ;;  %v783_v28 = vsub.f32 %v455_v49, %v767_v51  ;;  %v782_v37 = vsub.f32 %v452_v52, %v766_v7  ;;  %v816_v15 = vmul.f32 %v754_v35, %v1874_v22 }
 0x119   : > { %868 = vst [vmem:[%s1708_s29 + $0x80] sm:$0xff] %v836_v54  ;;  %869 = vst [vmem:[%s1708_s29 + $0x88] sm:$0xff] %v837_v24 }
 0x11a   : > { %v842_v5 = vadd.f32 %v810_v32, %v783_v28  ;;  %v843_v20 = vadd.f32 %v811_v39, %v783_v28  ;;  %v840_v55 = vadd.f32 %v808_v57, %v782_v37  ;;  %v841_v30 = vadd.f32 %v809_v38, %v782_v37 }
 0x11b   : > { %v461_v60 = vpop.xlane.xlu1 %460  ;;  %v458_v44 = vpop.xlane.xlu0 %457 }
 0x11c   : > { %874 = vst [vmem:[%s1708_s29 + $0xb0] sm:$0xff] %v842_v5  ;;  %875 = vst [vmem:[%s1708_s29 + $0xb8] sm:$0xff] %v843_v20  ;;  %v785_v36 = vsub.f32 %v461_v60, %v769_v53  ;;  %v784_v0 = vsub.f32 %v458_v44, %v768_v6 }
 0x11d   : > { %872 = vst [vmem:[%s1708_s29 + $0xa0] sm:$0xff] %v840_v55  ;;  %873 = vst [vmem:[%s1708_s29 + $0xa8] sm:$0xff] %v841_v30 }
 0x11e   : > { %v846_v23 = vadd.f32 %v814_v31, %v785_v36  ;;  %v847_v2 = vadd.f32 %v815_v59, %v785_v36  ;;  %v844_v63 = vadd.f32 %v812_v47, %v784_v0  ;;  %v845_v48 = vadd.f32 %v813_v17, %v784_v0 }
 0x11f   : > { %v467_v29 = vpop.xlane.xlu1 %466  ;;  %v464_v40 = vpop.xlane.xlu0 %463 }
 0x120   : > { %878 = vst [vmem:[%s1708_s29 + $0xd0] sm:$0xff] %v846_v23  ;;  %879 = vst [vmem:[%s1708_s29 + $0xd8] sm:$0xff] %v847_v2  ;;  %v787_v58 = vsub.f32 %v467_v29, %v771_v62  ;;  %v786_v34 = vsub.f32 %v464_v40, %v770_v13 }
 0x121   : > { %876 = vst [vmem:[%s1708_s29 + $0xc0] sm:$0xff] %v844_v63  ;;  %877 = vst [vmem:[%s1708_s29 + $0xc8] sm:$0xff] %v845_v48 }
 0x122   : > { %v850_v50 = vadd.f32 %v818_v21, %v787_v58  ;;  %v851_v51 = vadd.f32 %v819_v19, %v787_v58  ;;  %v848_v7 = vadd.f32 %v816_v15, %v786_v34  ;;  %v849_v14 = vadd.f32 %v817_v45, %v786_v34 }
 0x124   : > { %882 = vst [vmem:[%s1708_s29 + $0xf0] sm:$0xff] %v850_v50  ;;  %883 = vst [vmem:[%s1708_s29 + $0xf8] sm:$0xff] %v851_v51 }
 0x125   : > { %880 = vst [vmem:[%s1708_s29 + $0xe0] sm:$0xff] %v848_v7  ;;  %881 = vst [vmem:[%s1708_s29 + $0xe8] sm:$0xff] %v849_v14 }
 0x126 PF: > { %s14_s17 = sadd.s32 1, %s1113_s17   ;;  %s1876_s15 = smov %s1109_s16 }
 0x127   : > { %p11_p5 = scmp.ge.s32.totalorder %s14_s17, 4   ;;  %s1877_s16 = smov %s1879_s18 }
 0x129   :  { %13 = sbr.rel (!%p11_p5) target bundleno = 2 (0x2), region = 75 }

</bundles_post_ra>
